<compile_context>
chip_gen: v7x
topology: tpu7x:2x2x1
jax: 0.10.0
libtpu: 0.0.40
codegen_flags: <defaults>
</compile_context>

<pallas_src>
import functools

import jax
import jax.numpy as jnp
from jax.experimental import pallas as pl
from jax.experimental.pallas import tpu as pltpu


_LANE = 128
_SUBLANE = 8
_BUFFER_BUDGET = 8 * 1024 * 1024  # total double-buffered (in + out) block bytes


def _vmem_limit_bytes():
    """Generation-aware scoped-VMEM request (None -> keep compiler default)."""
    try:
        cap = pltpu.get_tpu_info().vmem_capacity_bytes
    except Exception:
        return None
    return int(min(cap // 2, 64 * 1024 * 1024))


def _pick_lane_tile(hw, n, itemsize, *, max_lanes=2048, budget=_BUFFER_BUDGET):
    """Largest multiple-of-128 divisor of hw within the lane / VMEM budget."""
    tile = min(hw, max_lanes)
    tile -= tile % _LANE
    tile = max(tile, _LANE)
    while tile > _LANE and 4 * n * tile * itemsize > budget:
        tile -= _LANE
    while hw % tile != 0:  # hw % 128 == 0 on this path -> terminates at >= 128
        tile -= _LANE
    return tile


def _pick_channel_tile(n, c, hw, itemsize, *, budget=_BUFFER_BUDGET):
    """Channel-tile for the fallback stat pass: multiple of 8 (or full C)."""
    cands = sorted({t for t in range(_SUBLANE, c + 1, _SUBLANE) if c % t == 0}
                   | {c})
    fitting = [t for t in cands if 2 * n * t * hw * itemsize <= budget]
    return fitting[-1] if fitting else cands[0]


def _pick_batch_tile(n, c, hw, itemsize, *, budget=_BUFFER_BUDGET):
    """Batch-tile for the fallback assemble pass (few, larger grid steps)."""
    bn = n
    while bn > 1 and 4 * bn * (c + 1) * hw * itemsize > budget:
        bn -= 1
    while n % bn != 0:
        bn -= 1
    return bn


# ---------------------------------------------------------------------------
# Primary path: single fused pass over the flattened (N, F) / (N, F_out) view.
# ---------------------------------------------------------------------------
def _fused_kernel(x_ref, o_ref, acc_ref, *, num_x_blocks, inv_n, inv_chw):
    # x_ref : (N, TILE) block of the flattened input (clamped/reused on the
    #         trailing fill steps -> no extra DMA).
    # o_ref : (N, TILE) block of the flattened (C+1)-channel output.
    # acc_ref: (1, 1) f32 VMEM accumulator for sum(std).
    s = pl.program_id(0)

    @pl.when(s == 0)
    def _init():
        acc_ref[...] = jnp.zeros_like(acc_ref)

    @pl.when(s < num_x_blocks)
    def _stat_and_copy():
        x = x_ref[...].astype(jnp.float32)                     # (N, TILE)
        mu = jnp.sum(x, axis=0, keepdims=True) * inv_n         # (1, TILE)
        d = x - mu
        var = jnp.sum(d * d, axis=0, keepdims=True) * inv_n    # population var
        acc_ref[...] += jnp.sum(jnp.sqrt(var), keepdims=True)  # (1, 1)
        o_ref[...] = x_ref[...].astype(o_ref.dtype)            # fused copy

    @pl.when(s >= num_x_blocks)
    def _fill_extra_channel():
        v = acc_ref[...] * inv_chw                              # (1, 1) f32
        o_ref[...] = jnp.broadcast_to(v, o_ref.shape).astype(o_ref.dtype)


def _minibatch_stddev_fused(x, n, c, h, w):
    hw = h * w
    f_in = c * hw
    f_out = (c + 1) * hw
    itemsize = jnp.dtype(x.dtype).itemsize
    tile = _pick_lane_tile(hw, n, itemsize)
    num_x_blocks = f_in // tile
    num_out_blocks = f_out // tile

    x_flat = x.reshape(n, f_in)

    out_flat = pl.pallas_call(
        functools.partial(_fused_kernel, num_x_blocks=num_x_blocks,
                          inv_n=1.0 / n, inv_chw=1.0 / f_in),
        out_shape=jax.ShapeDtypeStruct((n, f_out), x.dtype),
        grid_spec=pltpu.PrefetchScalarGridSpec(
            num_scalar_prefetch=0,
            grid=(num_out_blocks,),
            in_specs=[pl.BlockSpec(
                (n, tile), lambda s: (0, jnp.minimum(s, num_x_blocks - 1)))],
            out_specs=pl.BlockSpec((n, tile), lambda s: (0, s)),
            scratch_shapes=[pltpu.VMEM((1, 1), jnp.float32)],
        ),
        compiler_params=pltpu.CompilerParams(
            # Single axis carries the running sum(std) -> sequential.
            dimension_semantics=("arbitrary",),
            vmem_limit_bytes=_vmem_limit_bytes(),
        ),
    )(x_flat)
    return out_flat.reshape(n, c + 1, h, w)


# ---------------------------------------------------------------------------
# Fallback path: two passes, full-extent spatial blocks (H*W % 128 != 0).
# ---------------------------------------------------------------------------
def _stat_kernel(x_ref, v_ref, acc_ref, *, inv_n, inv_chw):
    # x_ref block: (N, TC, HW).  Batch reduction over the leading axis.
    s = pl.program_id(0)

    @pl.when(s == 0)
    def _init():
        acc_ref[...] = jnp.zeros_like(acc_ref)

    x = x_ref[...].astype(jnp.float32)
    mu = jnp.sum(x, axis=0, keepdims=True) * inv_n
    d = x - mu
    var = jnp.sum(d * d, axis=0) * inv_n                       # (TC, HW)
    acc_ref[...] += jnp.sum(jnp.sqrt(var), keepdims=True)      # (1, 1)

    @pl.when(s == pl.num_programs(0) - 1)
    def _finalize():
        v_ref[...] = acc_ref[...] * inv_chw


def _assemble_kernel(v_ref, x_ref, o_ref, *, c):
    # x block: (BN, C, HW); o block: (BN, C+1, HW); v: (1, 1) f32 in SMEM.
    o_ref[:, :c, :] = x_ref[...].astype(o_ref.dtype)
    v = v_ref[0, 0].astype(o_ref.dtype)
    o_ref[:, c:, :] = jnp.full((o_ref.shape[0], 1, o_ref.shape[2]), v,
                               dtype=o_ref.dtype)


def _minibatch_stddev_fallback(x, n, c, h, w):
    hw = h * w
    itemsize = jnp.dtype(x.dtype).itemsize
    x3 = x.reshape(n, c, hw)
    vmem_limit = _vmem_limit_bytes()

    # Pass 1: v = mean over (C,H,W) of the population std over the batch.
    tc = _pick_channel_tile(n, c, hw, itemsize)
    v = pl.pallas_call(
        functools.partial(_stat_kernel, inv_n=1.0 / n, inv_chw=1.0 / (c * hw)),
        out_shape=jax.ShapeDtypeStruct((1, 1), jnp.float32),
        grid_spec=pltpu.PrefetchScalarGridSpec(
            num_scalar_prefetch=0,
            grid=(c // tc,),
            in_specs=[pl.BlockSpec((n, tc, hw), lambda i: (0, i, 0))],
            out_specs=pl.BlockSpec((1, 1), lambda i: (0, 0)),
            scratch_shapes=[pltpu.VMEM((1, 1), jnp.float32)],
        ),
        compiler_params=pltpu.CompilerParams(
            dimension_semantics=("arbitrary",),
            vmem_limit_bytes=vmem_limit,
        ),
    )(x3)

    # Pass 2: copy the channels and broadcast v into the extra channel.
    bn = _pick_batch_tile(n, c, hw, itemsize)
    out3 = pl.pallas_call(
        functools.partial(_assemble_kernel, c=c),
        out_shape=jax.ShapeDtypeStruct((n, c + 1, hw), x.dtype),
        grid_spec=pltpu.PrefetchScalarGridSpec(
            num_scalar_prefetch=0,
            grid=(n // bn,),
            in_specs=[
                pl.BlockSpec(memory_space=pltpu.MemorySpace.SMEM),  # scalar v
                pl.BlockSpec((bn, c, hw), lambda b: (b, 0, 0)),
            ],
            out_specs=pl.BlockSpec((bn, c + 1, hw), lambda b: (b, 0, 0)),
        ),
        compiler_params=pltpu.CompilerParams(
            dimension_semantics=("parallel",),
            vmem_limit_bytes=vmem_limit,
        ),
    )(v, x3)
    return out3.reshape(n, c + 1, h, w)


def minibatch_stddev(x):
    """MiniBatchStddev forward: (N, C, H, W) -> (N, C+1, H, W)."""
    n, c, h, w = x.shape
    if (h * w) % _LANE == 0:
        return _minibatch_stddev_fused(x, n, c, h, w)
    return _minibatch_stddev_fallback(x, n, c, h, w)


def _reference(x):
    n, _, h, w = x.shape
    std = jnp.std(x.astype(jnp.float32), axis=0)  # population (ddof=0)
    v = jnp.mean(std).astype(x.dtype)
    return jnp.concatenate([x, jnp.full((n, 1, h, w), v, dtype=x.dtype)], axis=1)


if __name__ == "__main__":
    k1, k2 = jax.random.split(jax.random.PRNGKey(0))

    # Primary (fused, lane-aligned) path: H*W = 256 is a multiple of 128.
    x = jax.random.normal(k1, (2, 4, 16, 16), dtype=jnp.float32)
    out = jax.block_until_ready(minibatch_stddev(x))
    assert out.shape == (2, 5, 16, 16) and out.dtype == x.dtype
    assert jnp.allclose(out, _reference(x), atol=1e-5, rtol=1e-5), \
        "fused path mismatch vs reference"

    # Fallback path: H*W = 16 is not a multiple of 128.
    x_small = jax.random.normal(k2, (2, 4, 4, 4), dtype=jnp.float32)
    out_small = jax.block_until_ready(minibatch_stddev(x_small))
    assert out_small.shape == (2, 5, 4, 4) and out_small.dtype == x_small.dtype
    assert jnp.allclose(out_small, _reference(x_small), atol=1e-5, rtol=1e-5), \
        "fallback path mismatch vs reference"

    print("KERNEL_OK")
</pallas_src>

<mosaic_0001>
module attributes {stable_mosaic.version = 11 : i64} {
  func.func @_fused_kernel(%arg0: i32, %arg1: memref<2x256xf32, #tpu.memory_space<vmem>>, %arg2: memref<2x256xf32, #tpu.memory_space<vmem>>, %arg3: memref<1x1xf32, #tpu.memory_space<vmem>>) attributes {dimension_semantics = [#tpu.dimension_semantics<arbitrary>], iteration_bounds = array<i64: 5>, scalar_prefetch = 0 : i64, scratch_operands = 1 : i64, tpu.core_type = #tpu.core_type<tc>, window_params = [{transform_indices = @transform_0, window_bounds = array<i64: 2, 256>}, {transform_indices = @transform_1, window_bounds = array<i64: 2, 256>}]} {
    %c0_i32 = arith.constant 0 : i32
    %0 = arith.cmpi eq, %arg0, %c0_i32 : i32
    %1 = arith.extui %0 : i1 to i32
    %c0_i32_0 = arith.constant 0 : i32
    %2 = arith.cmpi ne, %1, %c0_i32_0 : i32
    scf.if %2 {
      %cst = arith.constant 0.000000e+00 : f32
      %9 = vector.broadcast %cst : f32 to vector<1x1xf32>
      %c0 = arith.constant 0 : index
      %c0_4 = arith.constant 0 : index
      %10 = vector.load %arg3[%c0, %c0_4] : memref<1x1xf32, #tpu.memory_space<vmem>>, vector<1x1xf32>
      tpu.vector_store %arg3[%c0, %c0_4], %9 {strides = array<i32>} : memref<1x1xf32, #tpu.memory_space<vmem>>, vector<1x1xf32>,
    } else {
    }
    %c4_i32 = arith.constant 4 : i32
    %3 = arith.cmpi slt, %arg0, %c4_i32 : i32
    %4 = arith.extui %3 : i1 to i32
    %c0_i32_1 = arith.constant 0 : i32
    %5 = arith.cmpi ne, %4, %c0_i32_1 : i32
    scf.if %5 {
      %c0 = arith.constant 0 : index
      %c0_4 = arith.constant 0 : index
      %9 = vector.load %arg1[%c0, %c0_4] : memref<2x256xf32, #tpu.memory_space<vmem>>, vector<2x256xf32>
      %cst = arith.constant dense<0.000000e+00> : vector<256xf32>
      %10 = vector.multi_reduction <add>, %9, %cst [0] : vector<2x256xf32> to vector<256xf32>
      %11 = vector.shape_cast %10 : vector<256xf32> to vector<1x256xf32>
      %cst_5 = arith.constant 5.000000e-01 : f32
      %12 = vector.broadcast %cst_5 : f32 to vector<1x256xf32>
      %13 = arith.mulf %11, %12 : vector<1x256xf32>
      %14 = vector.broadcast %13 : vector<1x256xf32> to vector<2x256xf32>
      %15 = arith.subf %9, %14 : vector<2x256xf32>
      %16 = arith.mulf %15, %15 : vector<2x256xf32>
      %cst_6 = arith.constant dense<0.000000e+00> : vector<256xf32>
      %17 = vector.multi_reduction <add>, %16, %cst_6 [0] : vector<2x256xf32> to vector<256xf32>
      %18 = vector.shape_cast %17 : vector<256xf32> to vector<1x256xf32>
      %cst_7 = arith.constant 5.000000e-01 : f32
      %19 = vector.broadcast %cst_7 : f32 to vector<1x256xf32>
      %20 = arith.mulf %18, %19 : vector<1x256xf32>
      %c0_8 = arith.constant 0 : index
      %c0_9 = arith.constant 0 : index
      %21 = vector.load %arg3[%c0_8, %c0_9] : memref<1x1xf32, #tpu.memory_space<vmem>>, vector<1x1xf32>
      %22 = math.sqrt %20 : vector<1x256xf32>
      %23 = vector.shape_cast %22 : vector<1x256xf32> to vector<1x1x256xf32>
      %cst_10 = arith.constant dense<0.000000e+00> : vector<1xf32>
      %24 = vector.multi_reduction <add>, %23, %cst_10 [1, 2] : vector<1x1x256xf32> to vector<1xf32>
      %25 = vector.shape_cast %24 : vector<1xf32> to vector<1x1x1xf32>
      %26 = vector.extract %25[0, 0, 0] : f32 from vector<1x1x1xf32>
      %27 = vector.broadcast %26 : f32 to vector<1x1xf32>
      %28 = arith.addf %21, %27 : vector<1x1xf32>
      %c0_11 = arith.constant 0 : index
      %c0_12 = arith.constant 0 : index
      %29 = vector.load %arg3[%c0_11, %c0_12] : memref<1x1xf32, #tpu.memory_space<vmem>>, vector<1x1xf32>
      tpu.vector_store %arg3[%c0_11, %c0_12], %28 {strides = array<i32>} : memref<1x1xf32, #tpu.memory_space<vmem>>, vector<1x1xf32>,
      %c0_13 = arith.constant 0 : index
      %c0_14 = arith.constant 0 : index
      %30 = vector.load %arg1[%c0_13, %c0_14] : memref<2x256xf32, #tpu.memory_space<vmem>>, vector<2x256xf32>
      %c0_15 = arith.constant 0 : index
      %c0_16 = arith.constant 0 : index
      %31 = vector.load %arg2[%c0_15, %c0_16] : memref<2x256xf32, #tpu.memory_space<vmem>>, vector<2x256xf32>
      tpu.vector_store %arg2[%c0_15, %c0_16], %30 {strides = array<i32>} : memref<2x256xf32, #tpu.memory_space<vmem>>, vector<2x256xf32>,
    } else {
    }
    %c4_i32_2 = arith.constant 4 : i32
    %6 = arith.cmpi sge, %arg0, %c4_i32_2 : i32
    %7 = arith.extui %6 : i1 to i32
    %c0_i32_3 = arith.constant 0 : i32
    %8 = arith.cmpi ne, %7, %c0_i32_3 : i32
    scf.if %8 {
      %c0 = arith.constant 0 : index
      %c0_4 = arith.constant 0 : index
      %9 = vector.load %arg3[%c0, %c0_4] : memref<1x1xf32, #tpu.memory_space<vmem>>, vector<1x1xf32>
      %cst = arith.constant 9.765625E-4 : f32
      %10 = vector.broadcast %cst : f32 to vector<1x1xf32>
      %11 = arith.mulf %9, %10 : vector<1x1xf32>
      %12 = vector.shape_cast %11 : vector<1x1xf32> to vector<1x1xf32>
      %13 = vector.broadcast %12 : vector<1x1xf32> to vector<2x256xf32>
      %c0_5 = arith.constant 0 : index
      %c0_6 = arith.constant 0 : index
      %14 = vector.load %arg2[%c0_5, %c0_6] : memref<2x256xf32, #tpu.memory_space<vmem>>, vector<2x256xf32>
      tpu.vector_store %arg2[%c0_5, %c0_6], %13 {strides = array<i32>} : memref<2x256xf32, #tpu.memory_space<vmem>>, vector<2x256xf32>,
    } else {
    }
    return
  }
  func.func @transform_0(%arg0: i32) -> (i32, i32) {
    %c3_i32 = arith.constant 3 : i32
    %0 = arith.minsi %arg0, %c3_i32 : i32
    %c0_i32 = arith.constant 0 : i32
    %c0_i32_0 = arith.constant 0 : i32
    return %c0_i32, %0 : i32, i32
  }
  func.func @transform_1(%arg0: i32) -> (i32, i32) {
    %c0_i32 = arith.constant 0 : i32
    %c0_i32_0 = arith.constant 0 : i32
    return %c0_i32, %arg0 : i32, i32
  }
}

</mosaic_0001>

<bundles_post_ra>
// kernel: tpu_custom_call.1
= control target key start
LH: loop header
LB: loop body
LE: loop exit
PB: predicated region body
PF: predicated region fallthrough
CT: control target
= control target key end

     0   :  { %6 = vsyncpa [#allocation4], 0  ;;  %s797_s0 = inlined_call_operand.hbm [shape: f32[2,1024], index: 0, kind: input, shape index: {}]   ;;  %s798_s1 = inlined_call_operand.hbm [shape: f32[2,1280], index: 1, kind: output, shape index: {}]  }
   0x1   :  { %8 = vsyncpa [#allocation4 + $0x1], 0 }
   0x2   :  { %9 = vsyncpa [#allocation5], 0 }
   0x3   :  { %11 = vsyncpa [#allocation5 + $0x1], 0  ;;  %s593_s6 = smov 0   ;;  %s595_s7 = smov 0  }
   0x4   :  { %s597_s8 = smov 0   ;;  %s599_s9 = smov 0  }
   0x5   :  { %s601_s10 = smov 0   ;;  %s603_s11 = smov 0  }
   0x6   :  { %s605_s12 = smov 0  }
   0x7 LB: > { %s627_s13 = sadd.s32 4294967295, %s576_s12   ;;  %s357_s14 = sadd.s32 4294967294, %s576_s12   ;;  %s576_s12 = sphi %s605_s12, %s815_s12   ;;  %s572_s11 = sphi %s603_s11, %s814_s11   ;;  %s568_s10 = sphi %s601_s10, %s813_s10   ;;  %s564_s9 = sphi %s599_s9, %s812_s9   ;;  %s560_s8 = sphi %s597_s8, %s811_s8   ;;  %s556_s7 = sphi %s595_s7, %s810_s7   ;;  %s552_s6 = sphi %s593_s6, %s809_s6  }
   0x8   : > { %s631_s15 = sadd.s32 1, %s576_s12   ;;  %p21_p0 = scmp.lt.s32.totalorder %s576_s12, 3 }
   0x9   : > { %p23_p1 = scmp.lt.s32.totalorder %s631_s15, 3  ;;  %s28_s16 = sadd.s32 1, %s572_s11 }
   0xa   : > { %s22_s17 = scalar_select %p21_p0, %s576_s12, 3 }
   0xb   : > { %s24_s18 = scalar_select %p23_p1, %s631_s15, 3 }
   0xc   : > { %p35_p2 = scmp.ne.s32.totalorder %s572_s11, %s568_s10  ;;  %p36_p3 = scmp.eq.s32.totalorder %s576_s12, 0 }
   0xd   : > { %s25_s19 = ssub.s32 %s22_s17, %s24_s18  ;;  %p41_p4 = scmp.ne.s32.totalorder %s568_s10, %s564_s9 }
   0xe   : > { %p26_p5 = scmp.eq.s32.totalorder %s25_s19, 0  ;;  %p642_p6 = por %p36_p3, %p35_p2 }
   0xf   : > { %p42_p7 = scmp.eq.s32.totalorder %s627_s13, 0  ;;  %s51_s21 = ssub.s32 %s576_s12, %s631_s15 }
  0x10   : > { %s650_s22 = scalar_select %p26_p5, %s572_s11, %s28_s16  }
  0x11   : > { %p652_p8 = por %p42_p7, %p41_p4  ;;  %p52_p9 = scmp.eq.s32.totalorder %s51_s21, 0 }
  0x12   : > { %s54_s24 = sadd.s32 1, %s560_s8  ;;  %p64_p10 = scmp.ne.s32.totalorder %s560_s8, %s556_s7 }
  0x13   : > { %s660_s25 = scalar_select %p52_p9, %s560_s8, %s54_s24  }
  0x14   : > { %p65_p11 = scmp.eq.s32.totalorder %s627_s13, 4  ;;  %p70_p12 = scmp.ne.s32.totalorder %s556_s7, %s552_s6 }
  0x15   : > { %p71_p13 = scmp.eq.s32.totalorder %s357_s14, 4  ;;  %p390_p1 = scmp.lt.s32.totalorder %s576_s12, 5 }
  0x16   : > { %p665_p0 = por %p65_p11, %p64_p10  ;;  %s91_s28 = sand.u32 1, %s572_s11  }
  0x17   : > { %p670_p2 = por %p71_p13, %p70_p12  ;;  %s360_s29 = sshll.u32 %s91_s28, 2 }
  0x18   : > { %s802_s26 = scalar_select %p665_p0, 1, 0 }
  0x19   : > { %s803_s27 = scalar_select %p670_p2, 1, 0 }
  0x1a   : > { %s374_s30 = sshll.u32 %s22_s17, 6  ;;  %s95_s5 = scalar_lea.vmem [#allocation3], %s360_s29 }
  0x1b   : > { %s678_s4 = scalar_lea.hbm %s797_s0, %s374_s30  ;;  %s105_s9 = sshll.u32 %s95_s5, 4  ;;  %s680_s9 = int_to_ptr.vmem [resolvable:$true] %s105_s9 }
  0x1c   : > { %p684_p3 = pnand %p390_p1, %p642_p6  ;;  %s92_s16 = scalar_lea.sflag [#allocation4], %s91_s28 }
  0x1d   : > { %s456_s17 = scalar_lea.hbm %s678_s4, 64  ;;  %s461_s20 = scalar_lea.hbm %s797_s0, 256 }
  0x1e   : > { %p457_p7 = scmp.ne.s32.totalorder %s678_s4, %s456_s17  ;;  %p458_p9 = pneg %p684_p3 }
  0x1f   : > { %p462_p6 = scmp.lt.u32.totalorder %s678_s4, %s797_s0  ;;  %p463_p12 = scmp.lt.u32.totalorder %s461_s20, %s456_s17 }
  0x20   : > { %p459_p10 = pnand %p458_p9, %p457_p7  ;;  %p465_p1 = scmp.lt.u32.totalorder %s456_s17, %s678_s4 }
  0x21   : > { %p464_p13 = por %p463_p12, %p462_p6 }
  0x22   : > { %p460_p11 = pneg %p459_p10 }
  0x23   : > { %p466_p4 = por %p465_p1, %p464_p13 }
  0x25   : > { %p467_p5 = pnand %p466_p4, %p460_p11 }
  0x27   : > { %470 = shalt.err (!%p467_p5)
}
  0x28   : > { %s471_s28 = scalar_lea.vmem %s680_s9, 64  ;;  %s578_s29 = smov [#allocation3]  }
  0x29   : > { %p472_p7 = scmp.ne.s32.totalorder %s680_s9, %s471_s28  ;;  %s476_s30 = sshll.u32 %s578_s29, 4  ;;  %s477_s30 = int_to_ptr.vmem [resolvable:$false] %s476_s30 }
  0x2a   : > { %s478_s2 = scalar_lea.vmem %s477_s30, 128  ;;  %p479_p0 = scmp.lt.s32.totalorder %s680_s9, %s477_s30 }
  0x2b   : > { %p474_p10 = pnand %p472_p7, %p458_p9  ;;  %p480_p6 = scmp.lt.s32.totalorder %s478_s2, %s471_s28 }
  0x2d   : > { %p475_p2 = pneg %p474_p10  ;;  %p481_p12 = por %p480_p6, %p479_p0 }
  0x2f   : > { %p482_p13 = pnand %p481_p12, %p475_p2 }
  0x31   : > { %485 = shalt.err (!%p482_p13)
}
  0x32   : > { %385 = dma.hbm_to_vmem [thread:$0]  (!%p684_p3), %s678_s4, 64, %s680_s9, %s92_s16  }
  0x33   : > { %p805_p4 = scmp.lt.s32.totalorder %s576_s12, 6  ;;  %p806_p5 = scmp.ge.s32.totalorder %s576_s12, 1 }
  0x35   : > { %p111_p9 = pnand %p806_p5, %p805_p4 }
  0x36   : > { %s116_s3 = sand.u32 (!%p111_p9), 1, %s568_s10  }
  0x37   : > { %114 = sbr.rel (%p111_p9) target bundleno = 517 (0x205), region = 24  ;;  %s720_s5 = sshll.u32 (!%p111_p9), %s116_s3, 2 }
  0x38   : > { %s117_s17 = scalar_lea.sflag (!%p111_p9), [#allocation4], %s116_s3  ;;  %s120_s18 = scalar_lea.vmem (!%p111_p9), [#allocation3], %s720_s5 }
  0x3e   : > { %543 = dma.done.wait (%p652_p8), %s117_s17, 64  }
  0x3f   : > { %545 = vsyncadd (%p652_p8), %s117_s17, 4294967232  ;;  %s136_s4 = sand.u32 1, %s556_s7   ;;  %p366_p0 = scmp.ne.s32.totalorder %s627_s13, 0 }
  0x40   : > { %s365_s9 = sshll.u32 %s136_s4, 2  ;;  %vm147_vm0 = vcmask (!%p366_p0), 0   ;;  %v579_v0 = vmov (!%p366_p0), 0.0  }
  0x41   : > { %s730_s14 = scalar_lea.vmem [#allocation6], %s365_s9  ;;  %146 = sbr.rel (%p366_p0) target bundleno = 72 (0x48), region = 32  ;;  %148 = vst.msk [vmem:[#allocation2] sm:$0x1] (!%p366_p0), %vm147_vm0, %v579_v0 }
  0x48 PF: > { %p367_p2 = scmp.ge.s32.totalorder %s627_s13, 4 }
  0x49   : > { %v158_v1 = vlaneseq (!%p367_p2)  ;;  %v580_v2 = vmov (!%p367_p2), 1983009808   ;;  %v153_v6 = vld [vmem:[%s120_s18] sm:$0xf] (!%p367_p2)  ;;  %vm165_vm1 = vcmask (!%p367_p2), 1041408   ;;  %vm237_vm5 = vcmask (!%p367_p2), 1040384  }
  0x4a   : > { %152 = sbr.rel (%p367_p2) target bundleno = 352 (0x160), region = 36  ;;  %v156_v3 = vunpack.c.l.s4 (!%p367_p2), %v580_v2  ;;  %v254_v61 = vld [vmem:[%s120_s18] sm:$0xf] (!%p367_p2)  ;;  %vm252_vm7 = vcmask (!%p367_p2), 0  }
  0x4b   : > { %v159_v4 = vshrl.u32 (!%p367_p2), %v158_v1, 7  ;;  %255 = vst [vmem:[%s730_s14] sm:$0xf] (!%p367_p2), %v254_v61 }
  0x4c   : > { %v157_v5 = vunpack.c.0.s8 (!%p367_p2), %v156_v3 }
  0x4e   : > { %v160_v7 = vsub.s32 (!%p367_p2), %v157_v5, %v159_v4  ;;  %v222_v5 = vld [vmem:[#allocation2] sm:$0x1] (!%p367_p2) }
  0x50   : > { %v161_v8 = vrot.slane (!%p367_p2), %v153_v6, %v160_v7 }
  0x52   : > { %v162_v9 = vcombine.high %v161_v8, %v161_v8  ;;  %v166_v10 = vsel %vm165_vm1, %v161_v8, 0.0 }
  0x53   : > { %v167_v11 = vrot.slane %v166_v10, 4 }
  0x54   : > { %v173_v12 = vsel %vm165_vm1, %v162_v9, 0.0 }
  0x55   : > { %v168_v13 = vadd.f32 %v167_v11, %v166_v10  ;;  %v174_v14 = vrot.slane %v173_v12, 4 }
  0x57   : > { %v169_v15 = vrot.slane %v168_v13, 2  ;;  %v175_v16 = vadd.f32 %v174_v14, %v173_v12 }
  0x59   : > { %v170_v17 = vadd.f32 %v169_v15, %v168_v13  ;;  %v176_v18 = vrot.slane %v175_v16, 2 }
  0x5b   : > { %v171_v19 = vrot.slane %v170_v17, 1  ;;  %v177_v20 = vadd.f32 %v176_v18, %v175_v16 }
  0x5d   : > { %v172_v21 = vadd.f32 %v171_v19, %v170_v17  ;;  %v178_v22 = vrot.slane %v177_v20, 1 }
  0x5f   : > { %v179_v23 = vadd.f32 %v178_v22, %v177_v20  ;;  %v180_v24 = vmul.f32 0.5, %v172_v21 }
  0x61   : > { %v181_v25 = vmul.f32 0.5, %v179_v23 }
  0x63   : > { %v184_v26 = vcombine.low %v180_v24, %v181_v25 }
  0x65   : > { %v191_v27 = vrot.slane %v184_v26, %v160_v7 }
  0x67   : > { %v193_v28 = vsub.f32 %v153_v6, %v191_v27 }
  0x69   : > { %v194_v29 = vmul.f32 %v193_v28, %v193_v28 }
  0x6b   : > { %v202_v30 = vrot.slane %v194_v29, %v160_v7 }
  0x6d   : > { %v203_v31 = vcombine.high %v202_v30, %v202_v30  ;;  %v206_v32 = vsel %vm165_vm1, %v202_v30, 0.0 }
  0x6e   : > { %v207_v33 = vrot.slane %v206_v32, 4 }
  0x6f   : > { %v213_v34 = vsel %vm165_vm1, %v203_v31, 0.0 }
  0x70   : > { %v208_v35 = vadd.f32 %v207_v33, %v206_v32  ;;  %v214_v36 = vrot.slane %v213_v34, 4 }
  0x72   : > { %v209_v37 = vrot.slane %v208_v35, 2  ;;  %v215_v38 = vadd.f32 %v214_v36, %v213_v34 }
  0x74   : > { %v210_v39 = vadd.f32 %v209_v37, %v208_v35  ;;  %v216_v40 = vrot.slane %v215_v38, 2 }
  0x76   : > { %v211_v41 = vrot.slane %v210_v39, 1  ;;  %v217_v42 = vadd.f32 %v216_v40, %v215_v38 }
  0x78   : > { %v212_v43 = vadd.f32 %v211_v41, %v210_v39  ;;  %v218_v44 = vrot.slane %v217_v42, 1 }
  0x7a   : > { %v219_v45 = vadd.f32 %v218_v44, %v217_v42  ;;  %v220_v46 = vmul.f32 0.5, %v212_v43 }
  0x7c   : > { %v221_v47 = vmul.f32 0.5, %v219_v45  ;;  %451 = vrsqrt.f32 %v220_v46  ;;  %vm225_vm2 = vcmp.eq.f32.partialorder %v220_v46, inf  ;;  %v228_v49 = vand.u32 2147483648, %v220_v46 }
  0x7d   : > { %vm227_vm3 = vcmp.eq.f32.partialorder %v220_v46, 0.0 }
  0x7e   : > { %453 = vrsqrt.f32 %v221_v47  ;;  %vm232_vm4 = vcmp.eq.f32.partialorder %v221_v47, inf  ;;  %v235_v52 = vand.u32 2147483648, %v221_v47  ;;  %vm234_vm6 = vcmp.eq.f32.partialorder %v221_v47, 0.0 }
  0x86   : > { %v452_v48 = vpop.eup %451 }
  0x87   : > { %v224_v50 = vmul.f32 %v452_v48, %v220_v46 }
  0x88   : > { %v454_v51 = vpop.eup %453 }
  0x89   : > { %v226_v53 = vsel %vm225_vm2, %v220_v46, %v224_v50  ;;  %v231_v54 = vmul.f32 %v454_v51, %v221_v47 }
  0x8a   : > { %v229_v55 = vsel %vm227_vm3, %v228_v49, %v226_v53 }
  0x8b   : > { %v233_v56 = vsel %vm232_vm4, %v221_v47, %v231_v54  ;;  %v238_v57 = vsel %vm237_vm5, %v229_v55, 0.0 }
  0x8c   : > { %v236_v58 = vsel %vm234_vm6, %v235_v52, %v233_v56 }
  0x8d   : > { %v239_v59 = vsel %vm237_vm5, %v236_v58, 0.0 }
  0x8e   : > { %v240_v60 = vadd.f32 %v239_v59, %v238_v57 }
  0x90   : > { %241 = vadd.xlane.f32.xlu0 %v240_v60 }
 0x11d   : > { %v242_v62 = vpop.xlane.xlu0 %241 }
 0x11e   : > { %v243_v63 = vrot.slane %v242_v62, 4 }
 0x120   : > { %v244_v0 = vadd.f32 %v243_v63, %v242_v62 }
 0x122   : > { %v245_v1 = vrot.slane %v244_v0, 2 }
 0x124   : > { %v246_v2 = vadd.f32 %v245_v1, %v244_v0 }
 0x126   : > { %v247_v3 = vrot.slane %v246_v2, 1 }
 0x128   : > { %v248_v4 = vadd.f32 %v247_v3, %v246_v2 }
 0x12a   : > { %376 = vpush %v248_v4 }
 0x15b   : > { %s377_s23 = spop %376 }
 0x15c   : > { %v250_v6 = vstv %s377_s23 }
 0x15d   : > { %v251_v7 = vadd.f32 %v250_v6, %v222_v5 }
 0x15f   : > { %253 = vst.msk [vmem:[#allocation2] sm:$0x1] %vm252_vm7, %v251_v7 }
 0x160 PF: > { %p368_p8 = scmp.lt.s32.totalorder %s627_s13, 4 }
 0x161   : > { %v263_v9 = vlaneseq (!%p368_p8)  ;;  %v581_v10 = vmov (!%p368_p8), 0  }
 0x162   : > { %259 = sbr.rel (%p368_p8) target bundleno = 492 (0x1ec), region = 40  ;;  %455 = vset.pattern.permute.xlu0 (!%p368_p8), %v581_v10 }
 0x163   : > { %v264_v12 = vshrl.u32 (!%p368_p8), %v263_v9, 7 }
 0x165   : > { %v265_v13 = vsub.s32 (!%p368_p8), 0, %v264_v12 }
 0x166   : > { %v260_v8 = vld [vmem:[#allocation2] sm:$0x1] (!%p368_p8) }
 0x167   : > { %v261_v11 = vmul.f32 (!%p368_p8), 0.0009765625, %v260_v8 }
 0x169   : > { %v266_v14 = vrot.slane %v261_v11, %v265_v13 }
 0x16b   : > { %268 = vperm.xlu0 %455, %v266_v14  }
 0x1ea   : > { %v269_v15 = vpop.permute.xlu0 %268 }
 0x1eb   : > { %271 = vst [vmem:[%s730_s14] sm:$0xf] %v269_v15 }
 0x1ec PF: > { %s375_s16 = sshll.u32 %s627_s13, 6  ;;  %s287_s24 = sshll.u32 %s730_s14, 4  ;;  %s288_s24 = int_to_ptr.vmem [resolvable:$true] %s287_s24 }
 0x1ed   : > { %s749_s21 = scalar_lea.hbm %s798_s1, %s375_s16  ;;  %s273_s28 = scalar_lea.sflag [#allocation5], %s136_s4 }
 0x1ee   : > { %s486_s29 = scalar_lea.vmem %s288_s24, 64  ;;  %p807_p11 = scmp.ne.s32.totalorder %s802_s26, 0 }
 0x1ef   : > { %p487_p3 = scmp.ne.s32.totalorder %s288_s24, %s486_s29  ;;  %s582_s30 = smov [#allocation6]  }
 0x1f0   : > { %s490_s2 = sshll.u32 %s582_s30, 4  ;;  %s491_s2 = int_to_ptr.vmem [resolvable:$false] %s490_s2 }
 0x1f1   : > { %p488_p1 = pnand %p487_p3, %p807_p11  ;;  %s492_s3 = scalar_lea.vmem %s491_s2, 128 }
 0x1f2   : > { %p493_p10 = scmp.lt.s32.totalorder %s288_s24, %s491_s2  ;;  %p494_p6 = scmp.lt.s32.totalorder %s492_s3, %s486_s29 }
 0x1f3   : > { %p489_p7 = pneg %p488_p1 }
 0x1f4   : > { %p495_p12 = por %p494_p6, %p493_p10 }
 0x1f6   : > { %p496_p13 = pnand %p495_p12, %p489_p7 }
 0x1f8   : > { %499 = shalt.err (!%p496_p13)
}
 0x1f9   : > { %s500_s13 = scalar_lea.hbm %s749_s21, 64  ;;  %s504_s18 = scalar_lea.hbm %s798_s1, 320 }
 0x1fa   : > { %p501_p4 = scmp.ne.s32.totalorder %s749_s21, %s500_s13  ;;  %p505_p0 = scmp.lt.u32.totalorder %s749_s21, %s798_s1 }
 0x1fb   : > { %p506_p2 = scmp.lt.u32.totalorder %s504_s18, %s500_s13  ;;  %p508_p3 = scmp.lt.u32.totalorder %s500_s13, %s749_s21 }
 0x1fc   : > { %p502_p5 = pnand %p501_p4, %p807_p11 }
 0x1fd   : > { %p507_p8 = por %p506_p2, %p505_p0 }
 0x1fe   : > { %p503_p9 = pneg %p502_p5 }
 0x1ff   : > { %p509_p1 = por %p508_p3, %p507_p8 }
 0x201   : > { %p510_p7 = pnand %p509_p1, %p503_p9 }
 0x203   : > { %513 = shalt.err (!%p510_p7)
}
 0x204   : > { %380 = dma.vmem_to_hbm [thread:$0]  (%p807_p11), %s288_s24, 64, %s749_s21, %s273_s28  }
 0x205 PF: > { %p391_p10 = scmp.ge.s32.totalorder %s576_s12, 2  ;;  %s299_s14 = sand.u32 1, %s552_s6  }
 0x206   : > { %p808_p6 = scmp.ne.s32.totalorder %s803_s27, 0  ;;  %s300_s23 = scalar_lea.sflag [#allocation5], %s299_s14 }
 0x208   : > { %p387_p12 = pnand %p391_p10, %p808_p6 }
 0x20a   : > { %547 = dma.done.wait (!%p387_p12), %s300_s23, 64  }
 0x20b   : > { %549 = vsyncadd (!%p387_p12), %s300_s23, 4294967232  ;;  %p14_p11 = scmp.ge.s32.totalorder %s631_s15, 7   ;;  %s809_s6 = smov %s556_s7 }
 0x20c   : > { %s810_s7 = smov %s560_s8  ;;  %s811_s8 = smov %s660_s25 }
 0x20d   : > { %s812_s9 = smov %s568_s10  ;;  %s813_s10 = smov %s572_s11 }
 0x20e   : > { %s814_s11 = smov %s650_s22  ;;  %s815_s12 = smov %s631_s15 }
 0x20f   :  { %16 = sbr.rel (!%p14_p11) target bundleno = 7 (0x7), region = 81 }
 0x216   :  { %305 = vsyncpa [#allocation4], 1 }
 0x217   :  { %307 = vsyncpa [#allocation4 + $0x1], 1 }
 0x218   :  { %308 = vsyncpa [#allocation5], 1 }
 0x219   :  { %310 = vsyncpa [#allocation5 + $0x1], 1 }

</bundles_post_ra>
